<compile_context>
chip_gen: v5e
topology: v5e:2x2
jax: 0.10.0
libtpu: 0.0.40
codegen_flags: <defaults>
</compile_context>

<pallas_src>
import functools

import jax
import jax.numpy as jnp
from jax import lax
from jax.experimental import pallas as pl
from jax.experimental.pallas import tpu as pltpu

EPS = 1e-5  # fairseq LayerNorm default eps

# Explicit scoped-VMEM limit: <= physical VMEM on every chip (64 MiB on v7x,
# 128 MiB on v5e/v6e).  Raise towards ~100 MiB on v6e if bigger tiles are wanted.
VMEM_LIMIT_BYTES = 64 * 1024 * 1024

# Working-set budget used when deriving tile sizes (double-buffered blocks + f32
# accumulator).  Leaves headroom under the limit above on every generation.
VMEM_BUDGET_BYTES = 40 * 1024 * 1024

_ROW_TILES = (512, 256, 128, 64, 32, 16, 8)   # sublane (row) tile candidates
_COL_TILES = (512, 256, 128)                  # lane (K / output-column) tile candidates
_Q_TILES = (256, 128, 64, 32, 16, 8)          # attention q-block candidates


def _pick_tile(dim, candidates):
    """Largest candidate that evenly divides `dim`; falls back to the full dim."""
    for c in candidates:
        if c <= dim and dim % c == 0:
            return c
    return dim


def _shrink_tile(dim, cur, candidates):
    for c in candidates:
        if c < cur and dim % c == 0:
            return c
    return None


def _fit_tiles(entries, cost_fn, budget=VMEM_BUDGET_BYTES):
    """entries: [(name, dim, candidates), ...].  Start from the largest valid
    candidate per dim, then shrink (in list order) until cost_fn(**tiles) fits."""
    tiles = {n: _pick_tile(d, c) for n, d, c in entries}
    while cost_fn(**tiles) > budget:
        for n, d, c in entries:
            s = _shrink_tile(d, tiles[n], c)
            if s is not None:
                tiles[n] = s
                break
        else:
            break
    return tiles


def _compiler_params(dimension_semantics):
    return pltpu.CompilerParams(dimension_semantics=dimension_semantics,
                                vmem_limit_bytes=VMEM_LIMIT_BYTES)


def _gelu(x):
    # exact (erf-based) GELU matching torch.nn.functional.gelu default; kept in f32
    # on every chip (v5e has no bf16 VPU/EUP).
    return 0.5 * x * (1.0 + lax.erf(x / jnp.sqrt(2.0).astype(x.dtype)))


def _layernorm(y, g, b):
    mean = jnp.mean(y, axis=-1, keepdims=True)
    var = jnp.mean(jnp.square(y - mean), axis=-1, keepdims=True)
    return (y - mean) * lax.rsqrt(var + EPS) * g + b


# ---------------------------------------------------------------------------
# Kernel 1: fused QKV projection  (tokens @ [wq|wk|wv] + [bq|bk|bv])
#   3-D grid (row tile, output-column tile, K tile) -> small weight / acc blocks.
# ---------------------------------------------------------------------------
def _qkv_kernel(x_ref, w_ref, b_ref, o_ref, acc_ref):
    k = pl.program_id(2)

    @pl.when(k == 0)
    def _():
        acc_ref[...] = jnp.zeros_like(acc_ref)

    acc_ref[...] += jnp.dot(x_ref[...].astype(w_ref.dtype), w_ref[...],
                            preferred_element_type=jnp.float32)

    @pl.when(k == pl.num_programs(2) - 1)
    def _():
        o_ref[...] = (acc_ref[...] + b_ref[...]).astype(o_ref.dtype)


def qkv_projection(tokens, w_qkv, b_qkv):
    """tokens: (N, C), w_qkv: (C, 3C) (already in MXU dtype), b_qkv: (3C,) -> (N, 3C)."""
    N, C = tokens.shape
    O = w_qkv.shape[1]
    ab = jnp.dtype(tokens.dtype).itemsize
    wb = jnp.dtype(w_qkv.dtype).itemsize
    t = _fit_tiles(
        [("tk", C, _COL_TILES), ("tn", O, (1024,) + _COL_TILES), ("tm", N, _ROW_TILES)],
        lambda tk, tn, tm: (2 * (tm * tk * ab + tk * tn * wb + tn * 4 + tm * tn * wb)
                            + tm * tn * 4))
    tm, tn, tk = t["tm"], t["tn"], t["tk"]
    return pl.pallas_call(
        _qkv_kernel,
        out_shape=jax.ShapeDtypeStruct((N, O), w_qkv.dtype),
        grid_spec=pltpu.PrefetchScalarGridSpec(
            num_scalar_prefetch=0,
            grid=(N // tm, O // tn, C // tk),
            in_specs=[
                pl.BlockSpec((tm, tk), lambda i, j, k: (i, k)),
                pl.BlockSpec((tk, tn), lambda i, j, k: (k, j)),
                pl.BlockSpec((1, tn), lambda i, j, k: (0, j)),
            ],
            out_specs=pl.BlockSpec((tm, tn), lambda i, j, k: (i, j)),
            scratch_shapes=[pltpu.VMEM((tm, tn), jnp.float32)],
        ),
        compiler_params=_compiler_params(("parallel", "parallel", "arbitrary")),
    )(tokens, w_qkv, b_qkv.reshape(1, O))


# ---------------------------------------------------------------------------
# Kernel 2: attention + Wo + bias + residual + LayerNorm1 (fully fused).
#   grid (batch, q-block); per-batch (T,3C) K/V slab and Wo stay resident in VMEM.
#   Per-head lane slicing (no head transposes, no (H,T,T) tensor); normalization
#   applied after the PV matmul.
# ---------------------------------------------------------------------------
def _attn_wo_ln_kernel(qkv_ref, res_ref, wo_ref, bo_ref, g_ref, bt_ref, o_ref,
                       *, num_heads, head_dim):
    C = num_heads * head_dim
    tq = res_ref.shape[1]
    q_off = pl.multiple_of(pl.program_id(1) * tq, tq)
    scale = head_dim ** -0.5

    outs = []
    for h in range(num_heads):
        q_h = qkv_ref[0, pl.ds(q_off, tq), pl.ds(h * head_dim, head_dim)]
        k_h = qkv_ref[0, :, pl.ds(C + h * head_dim, head_dim)]
        v_h = qkv_ref[0, :, pl.ds(2 * C + h * head_dim, head_dim)]
        # (tq, T) scores; contraction on last dims (no explicit transpose)
        s = lax.dot_general(q_h, k_h, (((1,), (1,)), ((), ())),
                            preferred_element_type=jnp.float32) * scale
        m = jnp.max(s, axis=-1, keepdims=True)
        p = jnp.exp(s - m)
        denom = jnp.sum(p, axis=-1, keepdims=True)
        o_h = jnp.dot(p.astype(v_h.dtype), v_h, preferred_element_type=jnp.float32)
        # normalize AFTER PV: O(tq*Dh) elementwise work instead of O(tq*T)
        outs.append(o_h * pl.reciprocal(denom, approx=True))
    attn = outs[0] if num_heads == 1 else jnp.concatenate(outs, axis=-1)  # (tq, C) f32

    proj = jnp.dot(attn.astype(wo_ref.dtype), wo_ref[...],
                   preferred_element_type=jnp.float32) + bo_ref[...]
    y = proj + res_ref[0].astype(jnp.float32)
    o_ref[0] = _layernorm(y, g_ref[...], bt_ref[...]).astype(o_ref.dtype)


def attention_wo_layernorm(qkv, residual, wo, bo, gamma, beta, *, num_heads, head_dim):
    """qkv: (B,T,3C), residual: (B,T,C) -> LN1(residual + MHA(qkv) @ wo + bo) : (B,T,C)."""
    B, T, O = qkv.shape
    C = num_heads * head_dim
    tq = _pick_tile(T, _Q_TILES)
    return pl.pallas_call(
        functools.partial(_attn_wo_ln_kernel, num_heads=num_heads, head_dim=head_dim),
        out_shape=jax.ShapeDtypeStruct((B, T, C), residual.dtype),
        grid=(B, T // tq),
        in_specs=[
            pl.BlockSpec((1, T, O), lambda b, q: (b, 0, 0)),    # K/V slab: resident per batch
            pl.BlockSpec((1, tq, C), lambda b, q: (b, q, 0)),   # residual rows for this block
            pl.BlockSpec((C, C), lambda b, q: (0, 0)),          # Wo: resident
            pl.BlockSpec((1, C), lambda b, q: (0, 0)),
            pl.BlockSpec((1, C), lambda b, q: (0, 0)),
            pl.BlockSpec((1, C), lambda b, q: (0, 0)),
        ],
        out_specs=pl.BlockSpec((1, tq, C), lambda b, q: (b, q, 0)),
        compiler_params=_compiler_params(("parallel", "parallel")),
    )(qkv, residual, wo, bo.reshape(1, C), gamma.reshape(1, C), beta.reshape(1, C))


# ---------------------------------------------------------------------------
# Kernel 3: FFN fused: fc1 + GELU + fc2 + bias + residual + LayerNorm2.
#   Loops (grid) over the F dimension: the (tm, tf) GELU activation lives only in
#   VMEM/vregs, never in HBM.  Emits both layer_result (pre-LN2 fc2 output) and x2.
# ---------------------------------------------------------------------------
def _ffn_res_ln_kernel(x_ref, w1_ref, b1_ref, w2_ref, b2_ref, g_ref, bt_ref,
                       lr_ref, o_ref, acc_ref):
    f = pl.program_id(1)

    @pl.when(f == 0)
    def _():
        acc_ref[...] = jnp.zeros_like(acc_ref)

    x = x_ref[...]
    h = jnp.dot(x.astype(w1_ref.dtype), w1_ref[...],
                preferred_element_type=jnp.float32) + b1_ref[...]
    h = _gelu(h)                                   # f32 GELU (portable across v5e/v6e/v7x)
    acc_ref[...] += jnp.dot(h.astype(w2_ref.dtype), w2_ref[...],
                            preferred_element_type=jnp.float32)

    @pl.when(f == pl.num_programs(1) - 1)
    def _():
        ffn = acc_ref[...] + b2_ref[...]
        lr_ref[...] = ffn.astype(lr_ref.dtype)     # layer_result (pre-LN2)
        y = ffn + x.astype(jnp.float32)            # residual is x1 itself
        o_ref[...] = _layernorm(y, g_ref[...], bt_ref[...]).astype(o_ref.dtype)


def ffn_residual_layernorm(x1, w1, b1, w2, b2, gamma, beta):
    """Returns (layer_result, LN2(x1 + fc2(gelu(fc1(x1))))).  x1: (N, C)."""
    N, C = x1.shape
    F = w1.shape[1]
    ab = jnp.dtype(x1.dtype).itemsize
    wb = jnp.dtype(w1.dtype).itemsize
    t = _fit_tiles(
        [("tf", F, _COL_TILES), ("tm", N, _ROW_TILES)],
        lambda tf, tm: (2 * (tm * C * ab + C * tf * wb + tf * 4 + tf * C * wb
                             + 3 * C * 4 + 2 * tm * C * ab) + tm * C * 4))
    tm, tf = t["tm"], t["tf"]
    return pl.pallas_call(
        _ffn_res_ln_kernel,
        out_shape=(jax.ShapeDtypeStruct((N, C), x1.dtype),
                   jax.ShapeDtypeStruct((N, C), x1.dtype)),
        grid_spec=pltpu.PrefetchScalarGridSpec(
            num_scalar_prefetch=0,
            grid=(N // tm, F // tf),
            in_specs=[
                pl.BlockSpec((tm, C), lambda i, f: (i, 0)),
                pl.BlockSpec((C, tf), lambda i, f: (0, f)),
                pl.BlockSpec((1, tf), lambda i, f: (0, f)),
                pl.BlockSpec((tf, C), lambda i, f: (f, 0)),
                pl.BlockSpec((1, C), lambda i, f: (0, 0)),
                pl.BlockSpec((1, C), lambda i, f: (0, 0)),
                pl.BlockSpec((1, C), lambda i, f: (0, 0)),
            ],
            out_specs=(pl.BlockSpec((tm, C), lambda i, f: (i, 0)),
                       pl.BlockSpec((tm, C), lambda i, f: (i, 0))),
            scratch_shapes=[pltpu.VMEM((tm, C), jnp.float32)],
        ),
        compiler_params=_compiler_params(("parallel", "arbitrary")),
    )(x1, w1, b1.reshape(1, F), w2, b2.reshape(1, C),
      gamma.reshape(1, C), beta.reshape(1, C))


# ---------------------------------------------------------------------------
# Layer wrapper
# ---------------------------------------------------------------------------
def transformer_sentence_encoder_layer(x, params, *, mxu_dtype=jnp.bfloat16):
    """x: (T, B, C) fairseq sequence-first layout.

    Returns (out (T,B,C), (None, layer_result (T,B,C))) matching
    TransformerSentenceEncoderLayer.forward (layer_norm_first=False, eval mode,
    no masks, need_weights=False).

    mxu_dtype=jnp.bfloat16 (default) streams weights and the QKV intermediate in
    bf16 (the MXU-native path on v5e/v6e/v7x) with f32 accumulation and f32
    LayerNorm / softmax / GELU statistics.  Pass jnp.float32 for a full-f32 path.
    """
    T, B, C = x.shape
    H = params["num_heads"]
    Dh = C // H

    # Pre-cast streamed weights to the MXU dtype once (parameter-load-time cast in a
    # real model): halves weight HBM traffic / VMEM buffers and removes in-kernel casts.
    w_qkv = params["w_qkv"].astype(mxu_dtype)
    wo = params["wo"].astype(mxu_dtype)
    w1 = params["w1"].astype(mxu_dtype)
    w2 = params["w2"].astype(mxu_dtype)

    # Batch-major token order so attention gets contiguous (T, 3C) slabs per batch.
    tokens = x.transpose(1, 0, 2).reshape(B * T, C)
    # TODO(synk): fold this transpose and the two output transposes into BlockSpec
    # index maps once sub-8 second-minor block dims on (T,B,C) are safe in Mosaic.

    # 1) fused QKV projection (qkv stored in the MXU dtype)
    qkv = qkv_projection(tokens, w_qkv, params["b_qkv"])

    # 2) attention + Wo + bias + residual + LayerNorm1 fused
    #    (the (N, C) attention output never round-trips HBM)
    x1 = attention_wo_layernorm(
        qkv.reshape(B, T, 3 * C), tokens.reshape(B, T, C),
        wo, params["bo"], params["ln1_g"], params["ln1_b"],
        num_heads=H, head_dim=Dh)

    # 3) fc1 + GELU + fc2 + residual + LayerNorm2 fused; GELU activation stays in VMEM
    layer_result, x2 = ffn_residual_layernorm(
        x1.reshape(B * T, C), w1, params["b1"], w2, params["b2"],
        params["ln2_g"], params["ln2_b"])

    out = x2.reshape(B, T, C).transpose(1, 0, 2)
    layer_result = layer_result.reshape(B, T, C).transpose(1, 0, 2)
    # need_weights=False in the reference forward -> attn weights are None
    return out, (None, layer_result)


# ---------------------------------------------------------------------------
# Pure-JAX reference (numerical check)
# ---------------------------------------------------------------------------
def reference_layer(x, params):
    T, B, C = x.shape
    H = params["num_heads"]
    Dh = C // H
    tok = x.reshape(T * B, C)

    q = tok @ params["wq"] + params["bq"]
    k = tok @ params["wk"] + params["bk"]
    v = tok @ params["wv"] + params["bv"]

    def heads(t):
        return t.reshape(T, B, H, Dh).transpose(1, 2, 0, 3)  # (B, H, T, Dh)

    qh = heads(q) * (jnp.float32(Dh) ** -0.5)
    kh, vh = heads(k), heads(v)
    s = jnp.einsum("bhqd,bhkd->bhqk", qh, kh)
    p = jax.nn.softmax(s, axis=-1)
    a = jnp.einsum("bhqk,bhkd->bhqd", p, vh)
    a = a.transpose(2, 0, 1, 3).reshape(T * B, C)
    attn_out = a @ params["wo"] + params["bo"]

    def ln(z, g, b):
        mu = jnp.mean(z, -1, keepdims=True)
        var = jnp.mean(jnp.square(z - mu), -1, keepdims=True)
        return (z - mu) * lax.rsqrt(var + EPS) * g + b

    x1 = ln(tok + attn_out, params["ln1_g"], params["ln1_b"])
    h = _gelu(x1 @ params["w1"] + params["b1"])
    ffn = h @ params["w2"] + params["b2"]
    x2 = ln(x1 + ffn, params["ln2_g"], params["ln2_b"])
    return x2.reshape(T, B, C), ffn.reshape(T, B, C)


def make_params(key, C, F, H):
    ks = jax.random.split(key, 8)
    s = 0.05
    p = {
        "num_heads": H,
        "wq": s * jax.random.normal(ks[0], (C, C), jnp.float32),
        "wk": s * jax.random.normal(ks[1], (C, C), jnp.float32),
        "wv": s * jax.random.normal(ks[2], (C, C), jnp.float32),
        "wo": s * jax.random.normal(ks[3], (C, C), jnp.float32),
        "bq": 0.01 * jnp.arange(C, dtype=jnp.float32),
        "bk": jnp.zeros((C,), jnp.float32),
        "bv": 0.01 * jnp.ones((C,), jnp.float32),
        "bo": jnp.zeros((C,), jnp.float32),
        "w1": s * jax.random.normal(ks[4], (C, F), jnp.float32),
        "b1": 0.01 * jnp.ones((F,), jnp.float32),
        "w2": s * jax.random.normal(ks[5], (F, C), jnp.float32),
        "b2": jnp.zeros((C,), jnp.float32),
        "ln1_g": 1.0 + 0.02 * jax.random.normal(ks[6], (C,), jnp.float32),
        "ln1_b": 0.01 * jnp.ones((C,), jnp.float32),
        "ln2_g": 1.0 + 0.02 * jax.random.normal(ks[7], (C,), jnp.float32),
        "ln2_b": jnp.zeros((C,), jnp.float32),
    }
    # Fused QKV weights (done once at parameter-load time, like a fused in_proj).
    p["w_qkv"] = jnp.concatenate([p["wq"], p["wk"], p["wv"]], axis=1)  # (C, 3C)
    p["b_qkv"] = jnp.concatenate([p["bq"], p["bk"], p["bv"]])          # (3C,)
    return p


if __name__ == "__main__":
    # small shapes consistent with the module: seq T=8, batch B=2,
    # embedding_dim C=32, ffn_embedding_dim F=64, num_attention_heads H=4
    T, B, C, F, H = 8, 2, 32, 64, 4
    key = jax.random.PRNGKey(0)
    kx, kp = jax.random.split(key)
    x = jax.random.normal(kx, (T, B, C), jnp.float32)
    params = make_params(kp, C, F, H)

    ref_out, ref_lr = reference_layer(x, params)

    # --- f32 MXU path: strict check ----------------------------------------
    out, (attn_w, layer_result) = transformer_sentence_encoder_layer(
        x, params, mxu_dtype=jnp.float32)
    out = jax.block_until_ready(out)
    layer_result = jax.block_until_ready(layer_result)
    assert attn_w is None
    assert out.shape == (T, B, C) and layer_result.shape == (T, B, C)
    # tolerance accounts for the EUP approximate-reciprocal softmax normalization
    assert jnp.allclose(out, ref_out, atol=5e-3, rtol=5e-3), \
        float(jnp.max(jnp.abs(out - ref_out)))
    assert jnp.allclose(layer_result, ref_lr, atol=5e-3, rtol=5e-3), \
        float(jnp.max(jnp.abs(layer_result - ref_lr)))

    # --- default bf16 MXU path (v5e/v6e/v7x MXU-native): loose check --------
    out_bf, (_, lr_bf) = transformer_sentence_encoder_layer(x, params)
    out_bf = jax.block_until_ready(out_bf)
    lr_bf = jax.block_until_ready(lr_bf)
    assert float(jnp.max(jnp.abs(out_bf - ref_out))) < 0.1
    assert float(jnp.max(jnp.abs(lr_bf - ref_lr))) < 0.1

    print("KERNEL_OK")
</pallas_src>

<mosaic_0001>
module attributes {stable_mosaic.version = 11 : i64} {
  func.func @_qkv_kernel(%arg0: i32, %arg1: i32, %arg2: i32, %arg3: memref<16x32xf32, #tpu.memory_space<vmem>>, %arg4: memref<32x96xf32, #tpu.memory_space<vmem>>, %arg5: memref<1x96xf32, #tpu.memory_space<vmem>>, %arg6: memref<16x96xf32, #tpu.memory_space<vmem>>, %arg7: memref<16x96xf32, #tpu.memory_space<vmem>>) attributes {dimension_semantics = [#tpu.dimension_semantics<parallel>, #tpu.dimension_semantics<parallel>, #tpu.dimension_semantics<arbitrary>], iteration_bounds = array<i64: 1, 1, 1>, scalar_prefetch = 0 : i64, scratch_operands = 1 : i64, tpu.core_type = #tpu.core_type<tc>, window_params = [{transform_indices = @transform_0, window_bounds = array<i64: 16, 32>}, {transform_indices = @transform_1, window_bounds = array<i64: 32, 96>}, {transform_indices = @transform_2, window_bounds = array<i64: 1, 96>}, {transform_indices = @transform_3, window_bounds = array<i64: 16, 96>}]} {
    %c0_i32 = arith.constant 0 : i32
    %0 = arith.cmpi eq, %arg2, %c0_i32 : i32
    %1 = arith.extui %0 : i1 to i32
    %c0_i32_0 = arith.constant 0 : i32
    %2 = arith.cmpi ne, %1, %c0_i32_0 : i32
    scf.if %2 {
      %cst_10 = arith.constant 0.000000e+00 : f32
      %12 = vector.broadcast %cst_10 : f32 to vector<16x96xf32>
      %c0_11 = arith.constant 0 : index
      %c0_12 = arith.constant 0 : index
      %13 = vector.load %arg7[%c0_11, %c0_12] : memref<16x96xf32, #tpu.memory_space<vmem>>, vector<16x96xf32>
      tpu.vector_store %arg7[%c0_11, %c0_12], %12 {strides = array<i32>} : memref<16x96xf32, #tpu.memory_space<vmem>>, vector<16x96xf32>,
    } else {
    }
    %c0 = arith.constant 0 : index
    %c0_1 = arith.constant 0 : index
    %3 = vector.load %arg7[%c0, %c0_1] : memref<16x96xf32, #tpu.memory_space<vmem>>, vector<16x96xf32>
    %c0_2 = arith.constant 0 : index
    %c0_3 = arith.constant 0 : index
    %4 = vector.load %arg3[%c0_2, %c0_3] : memref<16x32xf32, #tpu.memory_space<vmem>>, vector<16x32xf32>
    %c0_4 = arith.constant 0 : index
    %c0_5 = arith.constant 0 : index
    %5 = vector.load %arg4[%c0_4, %c0_5] : memref<32x96xf32, #tpu.memory_space<vmem>>, vector<32x96xf32>
    %cst = arith.constant dense<0.000000e+00> : vector<16x96xf32>
    %6 = tpu.matmul %4, %5, %cst {dimension_numbers = #tpu.dot_dimension_numbers<[1], [0], [0], [1], [0, 0, 1, 1], [], []>} : vector<16x32xf32>, vector<32x96xf32>, vector<16x96xf32> -> vector<16x96xf32>
    %7 = arith.addf %3, %6 : vector<16x96xf32>
    %c0_6 = arith.constant 0 : index
    %c0_7 = arith.constant 0 : index
    %8 = vector.load %arg7[%c0_6, %c0_7] : memref<16x96xf32, #tpu.memory_space<vmem>>, vector<16x96xf32>
    tpu.vector_store %arg7[%c0_6, %c0_7], %7 {strides = array<i32>} : memref<16x96xf32, #tpu.memory_space<vmem>>, vector<16x96xf32>,
    %c0_i32_8 = arith.constant 0 : i32
    %9 = arith.cmpi eq, %arg2, %c0_i32_8 : i32
    %10 = arith.extui %9 : i1 to i32
    %c0_i32_9 = arith.constant 0 : i32
    %11 = arith.cmpi ne, %10, %c0_i32_9 : i32
    scf.if %11 {
      %c0_10 = arith.constant 0 : index
      %c0_11 = arith.constant 0 : index
      %12 = vector.load %arg7[%c0_10, %c0_11] : memref<16x96xf32, #tpu.memory_space<vmem>>, vector<16x96xf32>
      %c0_12 = arith.constant 0 : index
      %c0_13 = arith.constant 0 : index
      %13 = vector.load %arg5[%c0_12, %c0_13] : memref<1x96xf32, #tpu.memory_space<vmem>>, vector<1x96xf32>
      %14 = vector.broadcast %13 : vector<1x96xf32> to vector<16x96xf32>
      %15 = arith.addf %12, %14 : vector<16x96xf32>
      %c0_14 = arith.constant 0 : index
      %c0_15 = arith.constant 0 : index
      %16 = vector.load %arg6[%c0_14, %c0_15] : memref<16x96xf32, #tpu.memory_space<vmem>>, vector<16x96xf32>
      tpu.vector_store %arg6[%c0_14, %c0_15], %15 {strides = array<i32>} : memref<16x96xf32, #tpu.memory_space<vmem>>, vector<16x96xf32>,
    } else {
    }
    return
  }
  func.func @transform_0(%arg0: i32, %arg1: i32, %arg2: i32) -> (i32, i32) {
    %c0_i32 = arith.constant 0 : i32
    return %arg0, %arg2 : i32, i32
  }
  func.func @transform_1(%arg0: i32, %arg1: i32, %arg2: i32) -> (i32, i32) {
    %c0_i32 = arith.constant 0 : i32
    return %arg2, %arg1 : i32, i32
  }
  func.func @transform_2(%arg0: i32, %arg1: i32, %arg2: i32) -> (i32, i32) {
    %c0_i32 = arith.constant 0 : i32
    %c0_i32_0 = arith.constant 0 : i32
    return %c0_i32, %arg1 : i32, i32
  }
  func.func @transform_3(%arg0: i32, %arg1: i32, %arg2: i32) -> (i32, i32) {
    %c0_i32 = arith.constant 0 : i32
    return %arg0, %arg1 : i32, i32
  }
}

</mosaic_0001>

<bundles_post_ra>
// kernel: tpu_custom_call.1
= control target key start
LH: loop header
LB: loop body
LE: loop exit
PB: predicated region body
PF: predicated region fallthrough
CT: control target
= control target key end

     0   :  { %8 = vsyncpa [#allocation4], 0  ;;  %s274_s0 = inlined_call_operand.hbm [shape: f32[16,32], index: 0, kind: input, shape index: {}]   ;;  %s275_s1 = inlined_call_operand.hbm [shape: f32[32,96], index: 1, kind: input, shape index: {}]   ;;  %s276_s2 = inlined_call_operand.vmem [shape: f32[1,96], index: 2, kind: input, shape index: {}]   ;;  %s277_s3 = inlined_call_operand.hbm [shape: f32[16,96], index: 3, kind: output, shape index: {}]  }
   0x1   :  { %9 = vsyncpa [#allocation7], 0 }
   0x2   :  { %10 = vsyncpa [#allocation5], 0  ;;  %s15_s14 = sshll.u32 %s274_s0, 4  ;;  %s221_s15 = smov [#allocation3]   ;;  %s16_s14 = int_to_ptr.hbm [resolvable:$true] %s15_s14 }
   0x3   :  { %s17_s16 = sshll.u32 %s221_s15, 4  ;;  %s28_s19 = sshll.u32 %s275_s1, 4  ;;  %s18_s16 = int_to_ptr.vmem [resolvable:$true] %s17_s16  ;;  %s29_s19 = int_to_ptr.hbm [resolvable:$true] %s28_s19 }
   0x4   :  { %s222_s20 = smov 128   ;;  %s223_s21 = smov 8  }
   0x5   :  { %23 = dma.hbm_to_vmem [thread:$0]  %s16_s14, 256, %s18_s16, [#allocation4], %s222_s20, %s222_s20, %s223_s21  }
   0x6   :  { %s224_s22 = smov [#allocation6]  }
   0x7   :  { %s30_s23 = sshll.u32 %s224_s22, 4  ;;  %s31_s23 = int_to_ptr.vmem [resolvable:$true] %s30_s23 }
   0x8   :  { %36 = dma.hbm_to_vmem [thread:$0]  %s29_s19, 512, %s31_s23, [#allocation7], %s222_s20, %s222_s20, %s223_s21  }
   0x9   :  { %215 = dma.done.wait [#allocation4], 256  }
   0xa   :  { %216 = vsyncadd [#allocation4], 4294967040 }
   0xb   :  { %217 = dma.done.wait [#allocation7], 512  }
   0xc   :  { %218 = vsyncadd [#allocation7], 4294966784  ;;  %vm51_vm0 = vcmask 785408   ;;  %v225_v0 = vmov 0.0   ;;  %v61_v1 = vld [vmem:[#allocation6 + $0x18] sm:$0xff]  ;;  %v60_v2 = vld [vmem:[#allocation6 + $0x10] sm:$0xff] }
   0xd   :  { %52 = vst.msk [vmem:[#allocation2] sm:$0xff] %vm51_vm0, %v225_v0  ;;  %81 = vmatpush.msra.mxu0 %v61_v1  ;;  %132 = vmatpush.msra.mxu1 %v61_v1  ;;  %v59_v3 = vld [vmem:[#allocation6 + $0x8] sm:$0xff]  ;;  %v58_v4 = vld [vmem:[#allocation6] sm:$0xff]  ;;  %v56_v5 = vld [vmem:[#allocation3] sm:$0xff]  ;;  %vm62_vm1 = vcmask 261120   ;;  %s226_s24 = smov [#allocation8]  }
   0xe   :  { %53 = vst.msk [vmem:[#allocation2 + $0x8] sm:$0xff] %vm51_vm0, %v225_v0  ;;  %v57_v6 = vld [vmem:[#allocation3 + $0x8] sm:$0xff]  ;;  %v142_v13 = vld [vmem:[%s276_s2] ss:$0 sm:$0xff]  ;;  %s114_s25 = sshll.u32 %s226_s24, 4  ;;  %s116_s28 = sshll.u32 %s277_s3, 4  ;;  %s115_s25 = int_to_ptr.vmem [resolvable:$true] %s114_s25  ;;  %s117_s28 = int_to_ptr.hbm [resolvable:$true] %s116_s28 }
   0xf   :  { %82 = vmatpush.msra.mxu0 %v60_v2  ;;  %133 = vmatpush.msra.mxu1 %v60_v2 }
  0x11   :  { %83 = vmatpush.msra.mxu0 %v59_v3  ;;  %134 = vmatpush.msra.mxu1 %v59_v3 }
  0x13   :  { %84 = vmatpush.msra.mxu0 %v58_v4  ;;  %135 = vmatpush.msra.mxu1 %v58_v4 }
  0x14   :  { %130 = vmatmul.msk.f32.vlgmr.msra.gmra.mxu0 %vm62_vm1, %v56_v5  ;;  %131 = vmatmul.msk.f32.vlgmr.msra.gmra.mxu1 %vm62_vm1, %v57_v6  ;;  %v54_v7 = vld [vmem:[#allocation2] sm:$0xff] }
  0x15   :  { %v55_v8 = vld [vmem:[#allocation2 + $0x8] sm:$0xff] }
  0x91   :  { %v86_v9 = vpop.f32.mrf.mxu0  ;;  %v89_v10 = vpop.f32.mrf.mxu1 }
  0x92   :  { %v92_v11 = vadd.f32 %v86_v9, %v54_v7  ;;  %v93_v12 = vadd.f32 %v89_v10, %v55_v8 }
  0x94   :  { %95 = vst.msk [vmem:[#allocation2] sm:$0xff] %vm51_vm0, %v92_v11 }
  0x95   :  { %96 = vst.msk [vmem:[#allocation2 + $0x8] sm:$0xff] %vm51_vm0, %v93_v12 }
  0x9b   :  { %v100_v14 = vld [vmem:[#allocation2] sm:$0xff] }
  0x9c   :  { %v101_v15 = vld [vmem:[#allocation2 + $0x8] sm:$0xff]  ;;  %v106_v16 = vadd.f32 %v142_v13, %v100_v14 }
  0x9d   :  { %v107_v17 = vadd.f32 %v142_v13, %v101_v15 }
  0x9e   :  { %108 = vst.msk [vmem:[#allocation8] sm:$0xff] %vm51_vm0, %v106_v16 }
  0x9f   :  { %109 = vst.msk [vmem:[#allocation8 + $0x8] sm:$0xff] %vm51_vm0, %v107_v17 }
  0xa0   :  { %122 = dma.vmem_to_hbm [thread:$0]  %s115_s25, 256, %s117_s28, [#allocation5], %s222_s20, %s222_s20, %s223_s21  }
  0xa1   :  { %219 = dma.done.wait [#allocation5], 256  }
  0xa2   :  { %220 = vsyncadd [#allocation5], 4294967040 }
  0xa3   :  { %127 = vsyncpa [#allocation4], 1 }
  0xa4   :  { %128 = vsyncpa [#allocation7], 1 }
  0xa5   :  { %129 = vsyncpa [#allocation5], 1 }

</bundles_post_ra>
